<compile_context>
chip_gen: v6e
topology: v6e:2x2x1
jax: 0.10.0
libtpu: 0.0.40
codegen_flags: <defaults>
</compile_context>

<pallas_src>
import jax
import jax.numpy as jnp
from jax import lax
from jax.experimental import pallas as pl
from jax.experimental.pallas import tpu as pltpu

# ---- module hyper-parameters (mirrors SinusoidalEncoder.__init__) ----
X_DIM = 3
MIN_DEG = 0
MAX_DEG = 4
NUM_FREQS = MAX_DEG - MIN_DEG          # L
LATENT_DIM = X_DIM * 2 * NUM_FREQS     # x_dim * len([sin, cos]) * L


def _round_up(a, b):
    return (a + b - 1) // b * b


def sinusoidal_kernel(x_ref, s_ref, o_ref):
    """Encodes a (tile_m, X_DIM) block of points into (tile_m, 2*X_DIM*L)."""
    x = x_ref[...]                      # (tm, X_DIM)   float32
    s = s_ref[...]                      # (X_DIM, OUT)  float32, OUT = 2*X_DIM*L
    # xb[n, c] = x[n, d] * scale(c)  — only one coordinate contributes per column,
    # so the broadcast-multiply-add below is exact f32 (no MXU rounding).
    xb = x[:, 0:1] * s[0:1, :]
    for d in range(1, X_DIM):
        xb = xb + x[:, d:d+1] * s[d:d+1, :]
    half = s.shape[-1] // 2
    col = lax.broadcasted_iota(jnp.int32, xb.shape, 1)
    # First half of the columns -> sin, second half -> cos (torch.cat order).
    o_ref[...] = jnp.where(col < half, jnp.sin(xb), jnp.cos(xb)).astype(o_ref.dtype)


def sinusoidal_encode(x, *, min_deg=MIN_DEG, max_deg=MAX_DEG, tile_m=1024):
    """Pallas forward matching SinusoidalEncoder.forward for x of shape (..., 3)."""
    assert x.shape[-1] == X_DIM
    num_freqs = max_deg - min_deg
    out_dim = 2 * X_DIM * num_freqs

    lead_shape = x.shape[:-1]
    x2 = x.reshape(-1, X_DIM).astype(jnp.float32)
    M = x2.shape[0]

    # Row tile: multiple of 8 sublanes, clamped for small inputs; pad rows to a
    # tile multiple so arbitrary batch sizes work (padded rows are sliced off).
    tile_m = max(8, min(tile_m, _round_up(M, 8)))
    Mp = _round_up(M, tile_m)
    if Mp != M:
        x2 = jnp.pad(x2, ((0, Mp - M), (0, 0)))

    # "Select + scale" table: S_half[d, d*L + j] = 2**(min_deg + j); duplicated
    # for the sin half and the cos half of the output columns.
    scales = 2.0 ** jnp.arange(min_deg, max_deg, dtype=jnp.float32)          # (L,)
    s_half = jnp.kron(jnp.eye(X_DIM, dtype=jnp.float32), scales[None, :])    # (3, 3L)
    s_full = jnp.concatenate([s_half, s_half], axis=-1)                      # (3, 6L)

    grid = (Mp // tile_m,)
    cost = pl.CostEstimate(
        flops=6 * Mp * out_dim,
        transcendentals=Mp * out_dim,
        bytes_accessed=Mp * (X_DIM + out_dim) * 4 + int(s_full.size) * 4,
    )

    out = pl.pallas_call(
        sinusoidal_kernel,
        out_shape=jax.ShapeDtypeStruct((Mp, out_dim), jnp.float32),
        grid_spec=pltpu.PrefetchScalarGridSpec(
            num_scalar_prefetch=0,
            grid=grid,
            in_specs=[
                pl.BlockSpec((tile_m, X_DIM), lambda i: (i, 0)),
                # Tiny scale table stays resident across all grid steps.
                pl.BlockSpec((X_DIM, out_dim), lambda i: (0, 0)),
            ],
            out_specs=pl.BlockSpec((tile_m, out_dim), lambda i: (i, 0)),
        ),
        compiler_params=pltpu.CompilerParams(
            dimension_semantics=("parallel",)),
        cost_estimate=cost,
    )(x2, s_full)

    out = out[:M]
    return out.reshape(*lead_shape, out_dim)


def sinusoidal_reference(x, min_deg=MIN_DEG, max_deg=MAX_DEG):
    """Plain-JAX reference matching the PyTorch forward."""
    scales = 2.0 ** jnp.arange(min_deg, max_deg, dtype=jnp.float32)
    xb = (x[..., None] * scales).reshape(*x.shape[:-1], x.shape[-1] * scales.shape[0])
    return jnp.concatenate([jnp.sin(xb), jnp.cos(xb)], axis=-1)


if __name__ == "__main__":
    key = jax.random.PRNGKey(0)
    B, N = 2, 8                                       # small (B, N, 3) batch of points
    x = jax.random.normal(key, (B, N, X_DIM), jnp.float32)

    out = sinusoidal_encode(x, min_deg=MIN_DEG, max_deg=MAX_DEG)
    out = jax.block_until_ready(out)

    ref = sinusoidal_reference(x, MIN_DEG, MAX_DEG)
    assert out.shape == (B, N, LATENT_DIM), out.shape
    assert jnp.allclose(out, ref, atol=1e-5, rtol=1e-5), "mismatch vs reference"

    print("KERNEL_OK")
</pallas_src>

<mosaic_0001>
module attributes {stable_mosaic.version = 11 : i64} {
  func.func @sinusoidal_kernel(%arg0: i32, %arg1: memref<16x3xf32, #tpu.memory_space<vmem>>, %arg2: memref<3x24xf32, #tpu.memory_space<vmem>>, %arg3: memref<16x24xf32, #tpu.memory_space<vmem>>) attributes {dimension_semantics = [#tpu.dimension_semantics<parallel>], iteration_bounds = array<i64: 1>, scalar_prefetch = 0 : i64, scratch_operands = 0 : i64, tpu.core_type = #tpu.core_type<tc>, window_params = [{transform_indices = @transform_0, window_bounds = array<i64: 16, 3>}, {pipeline_mode = #tpu.pipeline_mode<synchronous>, transform_indices = @transform_1, window_bounds = array<i64: 3, 24>}, {transform_indices = @transform_2, window_bounds = array<i64: 16, 24>}]} {
    %c0 = arith.constant 0 : index
    %c0_0 = arith.constant 0 : index
    %0 = vector.load %arg1[%c0, %c0_0] : memref<16x3xf32, #tpu.memory_space<vmem>>, vector<16x3xf32>
    %c0_1 = arith.constant 0 : index
    %c0_2 = arith.constant 0 : index
    %1 = vector.load %arg2[%c0_1, %c0_2] : memref<3x24xf32, #tpu.memory_space<vmem>>, vector<3x24xf32>
    %2 = vector.extract_strided_slice %0 {offsets = [0, 0], sizes = [16, 1], strides = [1, 1]} : vector<16x3xf32> to vector<16x1xf32>
    %3 = vector.extract_strided_slice %1 {offsets = [0, 0], sizes = [1, 24], strides = [1, 1]} : vector<3x24xf32> to vector<1x24xf32>
    %4 = vector.broadcast %2 : vector<16x1xf32> to vector<16x24xf32>
    %5 = vector.broadcast %3 : vector<1x24xf32> to vector<16x24xf32>
    %6 = arith.mulf %4, %5 : vector<16x24xf32>
    %7 = vector.extract_strided_slice %0 {offsets = [0, 1], sizes = [16, 1], strides = [1, 1]} : vector<16x3xf32> to vector<16x1xf32>
    %8 = vector.extract_strided_slice %1 {offsets = [1, 0], sizes = [1, 24], strides = [1, 1]} : vector<3x24xf32> to vector<1x24xf32>
    %9 = vector.broadcast %7 : vector<16x1xf32> to vector<16x24xf32>
    %10 = vector.broadcast %8 : vector<1x24xf32> to vector<16x24xf32>
    %11 = arith.mulf %9, %10 : vector<16x24xf32>
    %12 = arith.addf %6, %11 : vector<16x24xf32>
    %13 = vector.extract_strided_slice %0 {offsets = [0, 2], sizes = [16, 1], strides = [1, 1]} : vector<16x3xf32> to vector<16x1xf32>
    %14 = vector.extract_strided_slice %1 {offsets = [2, 0], sizes = [1, 24], strides = [1, 1]} : vector<3x24xf32> to vector<1x24xf32>
    %15 = vector.broadcast %13 : vector<16x1xf32> to vector<16x24xf32>
    %16 = vector.broadcast %14 : vector<1x24xf32> to vector<16x24xf32>
    %17 = arith.mulf %15, %16 : vector<16x24xf32>
    %18 = arith.addf %12, %17 : vector<16x24xf32>
    %19 = tpu.iota {dimensions = array<i32: 1>} : vector<16x24xi32>
    %c12_i32 = arith.constant 12 : i32
    %20 = vector.broadcast %c12_i32 : i32 to vector<16x24xi32>
    %21 = arith.cmpi slt, %19, %20 : vector<16x24xi32>
    %22 = math.sin %18 : vector<16x24xf32>
    %23 = math.cos %18 : vector<16x24xf32>
    %24 = arith.select %21, %22, %23 : vector<16x24xi1>, vector<16x24xf32>
    %c0_3 = arith.constant 0 : index
    %c0_4 = arith.constant 0 : index
    %25 = vector.load %arg3[%c0_3, %c0_4] : memref<16x24xf32, #tpu.memory_space<vmem>>, vector<16x24xf32>
    tpu.vector_store %arg3[%c0_3, %c0_4], %24 {strides = array<i32>} : memref<16x24xf32, #tpu.memory_space<vmem>>, vector<16x24xf32>,
    return
  }
  func.func @transform_0(%arg0: i32) -> (i32, i32) {
    %c0_i32 = arith.constant 0 : i32
    %c0_i32_0 = arith.constant 0 : i32
    return %arg0, %c0_i32 : i32, i32
  }
  func.func @transform_1(%arg0: i32) -> (i32, i32) {
    %c0_i32 = arith.constant 0 : i32
    %c0_i32_0 = arith.constant 0 : i32
    %c0_i32_1 = arith.constant 0 : i32
    return %c0_i32, %c0_i32_0 : i32, i32
  }
  func.func @transform_2(%arg0: i32) -> (i32, i32) {
    %c0_i32 = arith.constant 0 : i32
    %c0_i32_0 = arith.constant 0 : i32
    return %arg0, %c0_i32 : i32, i32
  }
}

</mosaic_0001>

<bundles_post_ra>
// kernel: tpu_custom_call.1
= control target key start
LH: loop header
LB: loop body
LE: loop exit
PB: predicated region body
PF: predicated region fallthrough
CT: control target
= control target key end

     0   :  { %v571_v1 = vmov 1   ;;  %v572_v2 = vmov 0   ;;  %s678_s0 = inlined_call_operand.vmem [shape: f32[16,3], index: 0, kind: input, shape index: {}]   ;;  %s679_s1 = inlined_call_operand.vmem [shape: f32[3,24], index: 1, kind: input, shape index: {}]   ;;  %s680_s2 = inlined_call_operand.hbm [shape: f32[16,24], index: 2, kind: output, shape index: {}]  }
   0x1   :  { %v12_v0 = vld [vmem:[%s678_s0] sm:$0xff]  ;;  %538 = vset.pattern.permute.xlu1 %v571_v1  ;;  %537 = vset.pattern.permute.xlu0 %v572_v2 }
   0x2   :  { %7 = vsyncpa [#allocation3], 0  ;;  %32 = vperm.xlu1 %538, %v12_v0   ;;  %17 = vperm.xlu0 %537, %v12_v0   ;;  %v13_v3 = vld [vmem:[%s678_s0 + $0x8] sm:$0xff]  ;;  %v573_v4 = vmov 2   ;;  %v25_v5 = vlaneseq  ;;  %v14_v9 = vld [vmem:[%s679_s1] sm:$0x7] }
   0x3   :  { %v574_v50 = vmov 683565275   ;;  %v575_v54 = vmov 2475754826   ;;  %v576_v56 = vmov 2131351028  }
   0x4   :  { %v26_v6 = vshrl.u32 %v25_v5, 7  ;;  %v577_v58 = vmov 2102212464   ;;  %v578_v60 = vmov 920167782   ;;  %s580_s0 = smov [#allocation2]  }
   0x5   :  { %s490_s1 = sshll.u32 %s580_s0, 4  ;;  %s491_s1 = int_to_ptr.vmem [resolvable:$true] %s490_s1 }
   0x6   :  { %36 = vperm.xlu1 %538, %v13_v3   ;;  %22 = vperm.xlu0 %537, %v13_v3   ;;  %v41_v7 = vsub.s32 1, %v26_v6  ;;  %v27_v8 = vsub.s32 0, %v26_v6  ;;  %v57_v12 = vsub.s32 2, %v26_v6  ;;  %s549_s15 = scalar_lea.vmem %s491_s1, 256  ;;  %p554_p1 = scmp.lt.s32.totalorder %s491_s1, %s491_s1 }
   0x7   :  { %p550_p0 = scmp.ne.s32.totalorder %s491_s1, %s549_s15  ;;  %p555_p2 = scmp.lt.s32.totalorder %s549_s15, %s549_s15 }
   0x8   :  { %v42_v13 = vrot.slane %v14_v9, %v41_v7  ;;  %v28_v14 = vrot.slane %v14_v9, %v27_v8  ;;  %v58_v17 = vrot.slane %v14_v9, %v57_v12 }
   0x9   :  { %p556_p3 = por %p555_p2, %p554_p1 }
   0xa   :  { %540 = vset.pattern.permute.xlu1 %v573_v4  ;;  %539 = vset.pattern.permute.xlu0 %v573_v4 }
   0xb   :  { %52 = vperm.xlu1 %540, %v13_v3   ;;  %48 = vperm.xlu0 %539, %v12_v0   ;;  %v579_v3 = vmov 1326507024   ;;  %p557_p4 = pnand %p556_p3, %p550_p0 }
  0x7d   :  { %v33_v10 = vpop.permute.xlu1 %32  ;;  %v18_v11 = vpop.permute.xlu0 %17 }
  0x7e   :  { %v43_v18 = vmul.f32 %v42_v13, %v33_v10  ;;  %v29_v19 = vmul.f32 %v28_v14, %v18_v11 }
  0x80   :  { %v45_v24 = vadd.f32 %v43_v18, %v29_v19 }
  0x81   :  { %v37_v15 = vpop.permute.xlu1 %36  ;;  %v23_v16 = vpop.permute.xlu0 %22 }
  0x82   :  { %v44_v20 = vmul.f32 %v42_v13, %v37_v15  ;;  %v30_v21 = vmul.f32 %v28_v14, %v23_v16 }
  0x84   :  { %v46_v25 = vadd.f32 %v44_v20, %v30_v21 }
  0x86   :  { %v53_v22 = vpop.permute.xlu1 %52  ;;  %v49_v23 = vpop.permute.xlu0 %48 }
  0x87   :  { %v60_v26 = vmul.f32 %v58_v17, %v53_v22  ;;  %v59_v27 = vmul.f32 %v58_v17, %v49_v23 }
  0x89   :  { %v608_v28 = vadd.f32 %v60_v26, %v46_v25  ;;  %v610_v29 = vadd.f32 %v59_v27, %v45_v24 }
  0x8b   :  { %v170_v30 = vand.u32 2147483647, %v608_v28  ;;  %v173_v31 = vand.u32 2139095040, %v608_v28  ;;  %v69_v32 = vand.u32 2139095040, %v610_v29  ;;  %v66_v35 = vand.u32 2147483647, %v610_v29 }
  0x8c   :  { %vm172_vm14 = vcmp.lt.s32.totalorder %v608_v28, 0 }
  0x8d   :  { %v174_v33 = vshrl.u32 %v173_v31, 23  ;;  %v177_v34 = vand.u32 8388607, %v170_v30  ;;  %v70_v36 = vshrl.u32 %v69_v32, 23  ;;  %v620_v41 = vand.u32 8388607, %v66_v35 }
  0x8e   :  { %vm171_vm15 = vcmp.le.f32.partialorder %v170_v30, 0.7853982 }
  0x8f   :  { %v505_v37 = vadd.s32 4294967169, %v174_v33  ;;  %v501_v38 = vadd.s32 4294967169, %v70_v36  ;;  %v178_v40 = vor.u32 8388608, %v177_v34  ;;  %v74_v48 = vor.u32 8388608, %v620_v41 }
  0x91   :  { %v180_v39 = vadd.s32 1, %v505_v37  ;;  %v76_v42 = vadd.s32 1, %v501_v38  ;;  %v622_v47 = vshll.u32 %v178_v40, 8 }
  0x93   :  { %vm181_vm0 = vcmp.gt.s32.totalorder %v180_v39, 0  ;;  %vm77_vm1 = vcmp.gt.s32.totalorder %v76_v42, 0 }
  0x94   :  { %v182_v43 = vsel %vm181_vm0, %v180_v39, 0  ;;  %v78_v46 = vsel %vm77_vm1, %v76_v42, 0  ;;  %vm68_vm0 = vcmp.lt.s32.totalorder %v610_v29, 0  ;;  %vm67_vm1 = vcmp.le.f32.partialorder %v66_v35, 0.7853982 }
  0x95   :  { %v183_v44 = vshrl.u32 %v182_v43, 5  ;;  %v184_v45 = vand.u32 31, %v182_v43  ;;  %v625_v52 = vshrl.u32 %v78_v46, 5  ;;  %v80_v53 = vand.u32 31, %v78_v46 }
  0x96   :  { %v114_v43 = vshll.u32 %v74_v48, 8 }
  0x97   :  { %v185_v49 = vsub.s32 32, %v184_v45  ;;  %v187_v51 = vshll.u32 %v574_v50, %v184_v45  ;;  %v190_v55 = vshll.u32 %v575_v54, %v184_v45  ;;  %v193_v57 = vshll.u32 %v576_v56, %v184_v45 }
  0x98   :  { %v196_v59 = vshll.u32 %v577_v58, %v184_v45  ;;  %v199_v61 = vshll.u32 %v578_v60, %v184_v45  ;;  %vm202_vm2 = vcmp.lt.s32.totalorder %v183_v44, 1  ;;  %vm203_vm3 = vcmp.lt.s32.totalorder %v183_v44, 2 }
  0x99   :  { %v188_v62 = vshrl.u32 %v575_v54, %v185_v49  ;;  %v191_v63 = vshrl.u32 %v576_v56, %v185_v49  ;;  %v194_v0 = vshrl.u32 %v577_v58, %v185_v49  ;;  %v186_v1 = vshrl.u32 %v574_v50, %v185_v49 }
  0x9a   :  { %v197_v2 = vshrl.u32 %v578_v60, %v185_v49  ;;  %v200_v4 = vshrl.u32 %v579_v3, %v185_v49  ;;  %v81_v9 = vsub.s32 32, %v80_v53  ;;  %vm204_vm4 = vcmp.lt.s32.totalorder %v183_v44, 3 }
  0x9b   :  { %v189_v6 = vor.u32 %v188_v62, %v187_v51  ;;  %v192_v7 = vor.u32 %v191_v63, %v190_v55  ;;  %v195_v8 = vor.u32 %v194_v0, %v193_v57  ;;  %vm205_vm5 = vcmp.lt.s32.totalorder %v183_v44, 4 }
  0x9c   :  { %v198_v10 = vor.u32 %v197_v2, %v196_v59  ;;  %v201_v11 = vor.u32 %v200_v4, %v199_v61  ;;  %v83_v19 = vshll.u32 %v574_v50, %v80_v53  ;;  %v84_v22 = vshrl.u32 %v575_v54, %v81_v9 }
  0x9d   :  { %v206_v12 = vsel %vm202_vm2, %v186_v1, %v189_v6  ;;  %v207_v13 = vsel %vm205_vm5, %v195_v8, 2102212464  ;;  %v210_v14 = vsel %vm202_vm2, %v189_v6, %v192_v7  ;;  %v214_v15 = vsel %vm202_vm2, %v192_v7, %v195_v8 }
  0x9e   :  { %v208_v16 = vsel %vm204_vm4, %v192_v7, %v207_v13  ;;  %v211_v17 = vsel %vm205_vm5, %v198_v10, 920167782  ;;  %v215_v18 = vsel %vm205_vm5, %v201_v11, 1326507024  ;;  %v86_v23 = vshll.u32 %v575_v54, %v80_v53 }
  0x9f   :  { %v212_v20 = vsel %vm204_vm4, %v195_v8, %v211_v17  ;;  %v216_v21 = vsel %vm204_vm4, %v198_v10, %v215_v18  ;;  %v209_v24 = vsel %vm203_vm3, %v206_v12, %v208_v16  ;;  %v87_v27 = vshrl.u32 %v576_v56, %v81_v9 }
  0xa0   :  { %v213_v25 = vsel %vm203_vm3, %v210_v14, %v212_v20  ;;  %v217_v26 = vsel %vm203_vm3, %v214_v15, %v216_v21  ;;  %v85_v36 = vor.u32 %v84_v22, %v83_v19  ;;  %v89_v38 = vshll.u32 %v576_v56, %v80_v53 }
  0xa1   :  { %v634_v31 = vmul.u32.u64.low %v622_v47, %v217_v26  ;;  %v635_v32 = vmul.u32.u64.high %v622_v47, %v217_v26, %v634_v31  ;;  %v638_v33 = vmul.u32.u64.low %v622_v47, %v213_v25  ;;  %v639_v34 = vmul.u32.u64.high %v622_v47, %v213_v25, %v638_v33 }
  0xa2   :  { %v88_v37 = vor.u32 %v87_v27, %v86_v23  ;;  %v90_v39 = vshrl.u32 %v577_v58, %v81_v9  ;;  %v92_v40 = vshll.u32 %v577_v58, %v80_v53  ;;  %v93_v41 = vshrl.u32 %v578_v60, %v81_v9 }
  0xa3   :  { %v96_v42 = vshrl.u32 %v579_v3, %v81_v9  ;;  %v225_v44 = vmul.u32 %v622_v47, %v209_v24  ;;  %v82_v45 = vshrl.u32 %v574_v50, %v81_v9  ;;  %v95_v49 = vshll.u32 %v578_v60, %v80_v53 }
  0xa4   :  { %v91_v46 = vor.u32 %v90_v39, %v89_v38  ;;  %vm227_vm6 = vc.u32 %v635_v32, %v638_v33  ;;  %v228_v51 = vadd.s32 1, %v639_v34  ;;  %v94_v54 = vor.u32 %v93_v41, %v92_v40 }
  0xa5   :  { %vm98_vm7 = vcmp.lt.s32.totalorder %v625_v52, 1  ;;  %v97_v55 = vor.u32 %v96_v42, %v95_v49  ;;  %vm100_vm8 = vcmp.lt.s32.totalorder %v625_v52, 3  ;;  %vm101_vm9 = vcmp.lt.s32.totalorder %v625_v52, 4 }
  0xa6   :  { %v106_v56 = vsel %vm98_vm7, %v85_v36, %v88_v37  ;;  %v229_v48 = vsel %vm227_vm6, %v228_v51, %v639_v34  ;;  %v103_v57 = vsel %vm101_vm9, %v91_v46, 2102212464  ;;  %v107_v47 = vsel %vm101_vm9, %v94_v54, 920167782 }
  0xa7   :  { %v110_v50 = vsel %vm98_vm7, %v88_v37, %v91_v46  ;;  %v230_v58 = vadd.s32 %v229_v48, %v225_v44  ;;  %vm99_vm10 = vcmp.lt.s32.totalorder %v625_v52, 2  ;;  %v108_v53 = vsel %vm100_vm8, %v91_v46, %v107_v47 }
  0xa8   :  { %v111_v59 = vsel %vm101_vm9, %v97_v55, 1326507024  ;;  %v102_v60 = vsel %vm98_vm7, %v82_v45, %v85_v36  ;;  %v104_v61 = vsel %vm100_vm8, %v88_v37, %v103_v57  ;;  %v109_v62 = vsel %vm99_vm10, %v106_v56, %v108_v53 }
  0xa9   :  { %v112_v63 = vsel %vm100_vm8, %v94_v54, %v111_v59  ;;  %v231_v0 = vadd.s32 536870912, %v230_v58  ;;  %v649_v2 = vmul.u32.u64.low %v114_v43, %v109_v62  ;;  %v650_v3 = vmul.u32.u64.high %v114_v43, %v109_v62, %v649_v2 }
  0xaa   :  { %v113_v1 = vsel %vm99_vm10, %v110_v50, %v112_v63  ;;  %v105_v8 = vsel %vm99_vm10, %v102_v60, %v104_v61  ;;  %v226_v24 = vadd.s32 %v638_v33, %v635_v32  ;;  %vm262_vm9 = vweird.f32 %v608_v28 }
  0xab   :  { %v652_v4 = vmul.u32.u64.low %v114_v43, %v113_v1  ;;  %v653_v6 = vmul.u32.u64.high %v114_v43, %v113_v1, %v652_v4  ;;  %v232_v7 = vshrl.u32 %v231_v0, 30  ;;  %v124_v10 = vadd.s32 1, %v650_v3 }
  0xac   :  { %v121_v52 = vmul.u32 %v114_v43, %v105_v8  ;;  %v64_v4 = vand.u32 127, %v25_v5  ;;  %vm482_vm10 = vcmask 195584  }
  0xad   :  { %v233_v9 = vshll.u32 %v232_v7, 30  ;;  %vm123_vm11 = vc.u32 %v653_v6, %v649_v2  ;;  %v122_v45 = vadd.s32 %v649_v2, %v653_v6  ;;  %v256_v56 = vsub.s32 4, %v232_v7 }
  0xae   :  { %v125_v12 = vsel %vm123_vm11, %v124_v10, %v650_v3  ;;  %vm65_vm2 = vcmp.lt.s32.totalorder %v64_v4, 12 }
  0xaf   :  { %v234_v11 = vsub.s32 %v230_v58, %v233_v9  ;;  %v126_v13 = vadd.s32 %v125_v12, %v121_v52  ;;  %v257_v53 = vsel %vm172_vm14, %v256_v56, %v232_v7 }
  0xb0   :  { %v259_v62 = vsel %vm171_vm15, 0, %v257_v53 }
  0xb1   :  { %v236_v14 = vsub.s32 0, %v234_v11  ;;  %v127_v15 = vadd.s32 536870912, %v126_v13  ;;  %v263_v1 = vadd.s32 3, %v259_v62  ;;  %v470_v6 = vand.u32 3, %v259_v62 }
  0xb3   :  { %v506_v16 = vmin.u32 %v236_v14, %v234_v11  ;;  %v128_v17 = vshrl.u32 %v127_v15, 30  ;;  %v264_v7 = vand.u32 3, %v263_v1  ;;  %vm472_vm4 = vcmp.eq.s32.totalorder %v470_v6, 0 }
  0xb4   :  { %vm475_vm5 = vcmp.eq.s32.totalorder %v470_v6, 2  ;;  %vm471_vm8 = vcmp.lt.s32.totalorder %v470_v6, 2 }
  0xb5   :  { %v238_v18 = vclz %v506_v16  ;;  %v129_v19 = vshll.u32 %v128_v17, 30  ;;  %v152_v0 = vsub.s32 4, %v128_v17  ;;  %vm269_vm3 = vcmp.eq.s32.totalorder %v264_v7, 2 }
  0xb6   :  { %vm266_vm6 = vcmp.eq.s32.totalorder %v264_v7, 0  ;;  %vm265_vm7 = vcmp.lt.s32.totalorder %v264_v7, 2 }
  0xb7   :  { %v507_v20 = vadd.s32 4294967294, %v238_v18  ;;  %v130_v21 = vsub.s32 %v126_v13, %v129_v19  ;;  %v153_v3 = vsel %vm68_vm0, %v152_v0, %v128_v17 }
  0xb8   :  { %v155_v9 = vsel %vm67_vm1, 0, %v153_v3 }
  0xb9   :  { %vm508_vm12 = vcmp.lt.s32.totalorder %v507_v20, 0  ;;  %v132_v23 = vsub.s32 0, %v130_v21  ;;  %v159_v35 = vadd.s32 3, %v155_v9  ;;  %v367_v19 = vand.u32 3, %v155_v9 }
  0xba   :  { %v241_v22 = vsel %vm508_vm12, 0, %v507_v20 }
  0xbb   :  { %v242_v25 = vsub.s32 32, %v241_v22  ;;  %v246_v26 = vsub.s32 4294967266, %v241_v22  ;;  %v502_v27 = vmin.u32 %v132_v23, %v130_v21  ;;  %v243_v31 = vshll.u32 %v234_v11, %v241_v22 }
  0xbc   :  { %v160_v20 = vand.u32 3, %v159_v35  ;;  %vm372_vm12 = vcmp.eq.s32.totalorder %v367_v19, 2 }
  0xbd   :  { %v244_v34 = vshrl.u32 %v226_v24, %v242_v25  ;;  %v247_v36 = vadd.s32 127, %v246_v26  ;;  %v134_v37 = vclz %v502_v27 }
  0xbe   :  { %vm165_vm11 = vcmp.eq.s32.totalorder %v160_v20, 2 }
  0xbf   :  { %v245_v38 = vor.u32 %v244_v34, %v243_v31  ;;  %v248_v39 = vshll.u32 %v247_v36, 23  ;;  %v503_v40 = vadd.s32 4294967294, %v134_v37 }
  0xc1   :  { %v249_v41 = vor.u32 4788187, %v248_v39  ;;  %vm504_vm13 = vcmp.lt.s32.totalorder %v503_v40, 0  ;;  %v252_v43 = vcvt.s32.f32 %v245_v38 }
  0xc2   :  { %v137_v44 = vsel %vm504_vm13, 0, %v503_v40  ;;  %vm162_vm13 = vcmp.eq.s32.totalorder %v160_v20, 0 }
  0xc3   :  { %v250_v42 = vand.u32 2147483647, %v249_v41  ;;  %v138_v46 = vsub.s32 32, %v137_v44  ;;  %v142_v49 = vsub.s32 4294967266, %v137_v44  ;;  %v139_v33 = vshll.u32 %v130_v21, %v137_v44 }
  0xc5   :  { %v253_v32 = vmul.f32 %v252_v43, %v250_v42  ;;  %v140_v51 = vshrl.u32 %v122_v45, %v138_v46  ;;  %v143_v54 = vadd.s32 127, %v142_v49 }
  0xc7   :  { %v254_v55 = vxor.u32 2147483648, %v253_v32  ;;  %v141_v48 = vor.u32 %v140_v51, %v139_v33  ;;  %v144_v57 = vshll.u32 %v143_v54, 23 }
  0xc9   :  { %v255_v47 = vsel %vm172_vm14, %v254_v55, %v253_v32  ;;  %v145_v58 = vor.u32 4788187, %v144_v57  ;;  %v148_v60 = vcvt.s32.f32 %v141_v48  ;;  %vm369_vm14 = vcmp.eq.s32.totalorder %v367_v19, 0 }
  0xca   :  { %v258_v50 = vsel %vm171_vm15, %v608_v28, %v255_v47  ;;  %vm161_vm15 = vcmp.lt.s32.totalorder %v160_v20, 2 }
  0xcb   :  { %541 = vcosq.f32 %v258_v50  ;;  %v146_v59 = vand.u32 2147483647, %v145_v58 }
  0xcc   :  { %543 = vsinq.f32 %v258_v50 }
  0xcd   :  { %v149_v61 = vmul.f32 %v148_v60, %v146_v59 }
  0xcf   :  { %v150_v63 = vxor.u32 2147483648, %v149_v61 }
  0xd1   :  { %v151_v30 = vsel %vm68_vm0, %v150_v63, %v149_v61  ;;  %vm368_vm0 = vcmp.lt.s32.totalorder %v367_v19, 2 }
  0xd2   :  { %v154_v2 = vsel %vm67_vm1, %v610_v29, %v151_v30  ;;  %vm158_vm1 = vweird.f32 %v610_v29 }
  0xd3   :  { %545 = vcosq.f32 %v154_v2 }
  0xd4   :  { %547 = vsinq.f32 %v154_v2 }
  0xd8   :  { %v542_v8 = vpop.eup %541 }
  0xd9   :  { %v544_v10 = vpop.eup %543  ;;  %v270_v52 = vxor.u32 2147483648, %v542_v8 }
  0xda   :  { %v267_v11 = vxor.u32 2147483648, %v544_v10 }
  0xdb   :  { %v271_v12 = vsel %vm269_vm3, %v270_v52, %v544_v10  ;;  %v477_v13 = vsel %vm475_vm5, %v270_v52, %v544_v10 }
  0xdc   :  { %v268_v14 = vsel %vm266_vm6, %v542_v8, %v267_v11  ;;  %v474_v15 = vsel %vm472_vm4, %v542_v8, %v267_v11 }
  0xdd   :  { %v272_v5 = vsel %vm265_vm7, %v268_v14, %v271_v12  ;;  %v478_v16 = vsel %vm471_vm8, %v474_v15, %v477_v13 }
  0xde   :  { %v273_v17 = vsel %vm262_vm9, nan, %v272_v5  ;;  %v479_v18 = vsel %vm262_vm9, nan, %v478_v16 }
  0xdf   :  { %v481_v21 = vsel %vm65_vm2, %v273_v17, %v479_v18 }
  0xe0   :  { %484 = vst.msk [vmem:[#allocation2 + $0x8] sm:$0xff] %vm482_vm10, %v481_v21  ;;  %v546_v22 = vpop.eup %545 }
  0xe1   :  { %v548_v23 = vpop.eup %547  ;;  %v166_v24 = vxor.u32 2147483648, %v546_v22 }
  0xe2   :  { %v163_v25 = vxor.u32 2147483648, %v548_v23 }
  0xe3   :  { %v167_v26 = vsel %vm165_vm11, %v166_v24, %v548_v23  ;;  %v374_v28 = vsel %vm372_vm12, %v166_v24, %v548_v23 }
  0xe4   :  { %v164_v27 = vsel %vm162_vm13, %v546_v22, %v163_v25  ;;  %v371_v31 = vsel %vm369_vm14, %v546_v22, %v163_v25 }
  0xe5   :  { %v168_v34 = vsel %vm161_vm15, %v164_v27, %v167_v26  ;;  %v375_v36 = vsel %vm368_vm0, %v371_v31, %v374_v28 }
  0xe6   :  { %v169_v37 = vsel %vm158_vm1, nan, %v168_v34  ;;  %v376_v38 = vsel %vm158_vm1, nan, %v375_v36 }
  0xe7   :  { %v480_v39 = vsel %vm65_vm2, %v169_v37, %v376_v38 }
  0xe8   :  { %483 = vst.msk [vmem:[#allocation2] sm:$0xff] %vm482_vm10, %v480_v39 }
  0xe9   :  { %560 = shalt.err (!%p557_p4)
}
  0xea   :  { %s581_s16 = smov 128   ;;  %s582_s17 = smov 8  }
  0xeb   :  { %496 = dma.vmem_to_hbm [thread:$0]  %s491_s1, 256, %s680_s2, [#allocation3], %s581_s16, %s581_s16, %s582_s17  }
  0xec   :  { %569 = dma.done.wait [#allocation3], 256  }
  0xed   :  { %570 = vsyncadd [#allocation3], 4294967040 }
  0xee   :  { %500 = vsyncpa [#allocation3], 1 }

</bundles_post_ra>
